<compile_context>
chip_gen: v7x
topology: tpu7x:2x2x1
jax: 0.10.0
libtpu: 0.0.40
codegen_flags: <defaults>
</compile_context>

<pallas_src>
import math
import numpy as np

import jax
import jax.numpy as jnp
from jax.experimental import pallas as pl
from jax.experimental.pallas import tpu as pltpu


def _tph_fourier_kernel(x_ref, freq_ref, phase_ref, scale_ref, o_ref):
    """One (rank-block, point-tile) of the output.

    x_ref:     (D, TP)      eval point coordinates (points lane-dense)
    freq_ref:  (R_blk, D)   frequency per (rank, dim); 0 for the constant basis
    phase_ref: (R_blk, D)   phase: 0 -> sin, pi/2 -> cos / constant
    scale_ref: (R_blk, 1)   per-rank normalization (prod over dims); 0 on pad rows
    o_ref:     (R_blk, TP)  product over dims, scaled
    """
    x = x_ref[...]
    freq = freq_ref[...]
    phase = phase_ref[...]
    D = x.shape[0]
    # d = 0 term initializes the accumulator (no multiply-by-ones); D is small
    # and static, so the Python loop unrolls fully.
    acc = jnp.sin(x[0:1, :] * freq[:, 0:1] + phase[:, 0:1])
    for d in range(1, D):
        acc = acc * jnp.sin(x[d:d + 1, :] * freq[:, d:d + 1]
                            + phase[:, d:d + 1])
    o_ref[...] = acc * scale_ref[...]                 # single end scale


def _round_up(v, m):
    return ((v + m - 1) // m) * m


def _pick_rank_block(r8):
    """Largest sublane-multiple block (<= 32) dividing the padded rank exactly,
    so no rank rows are wasted and the per-step accumulator stays small."""
    return max(m for m in (8, 16, 24, 32) if r8 % m == 0)


def random_tph_fourier(eval_points, params, rank, *, tp=4096,
                       transposed_output=True):
    """eval_points: (n_points, D) -> (n_points, rank) [or (rank, n_points)].

    transposed_output=False returns the kernel's native lane-dense
    (rank, n_points) layout and skips the post-kernel HBM transpose pass —
    preferred whenever the consumer can be written against that layout.
    """
    freq, phase, scale = params                       # (rank, D), (rank, D), (rank, 1)
    n_points, D = eval_points.shape
    assert freq.shape == (rank, D)

    # --- rank tiling --------------------------------------------------------
    r8 = max(8, _round_up(rank, 8))
    r_blk = _pick_rank_block(r8)
    r_pad = _round_up(r8, r_blk)
    n_rblk = r_pad // r_blk

    # --- point tiling -------------------------------------------------------
    tp_req = max(128, (int(tp) // 128) * 128)
    n_min = _round_up(n_points, 128)
    tp_eff = min(tp_req, n_min)
    if n_min >= 256:
        # Keep >= 2 point tiles so both v7x TensorCores get work.
        tp_eff = min(tp_eff, max(128, (n_min // 2 // 128) * 128))
    n_pad = _round_up(n_points, tp_eff)
    n_pblk = n_pad // tp_eff

    # --- host-side prep -----------------------------------------------------
    # Points lane-dense (D, n_pad), built with a single pad of the transposed
    # points.  (If the producer already holds (D, n_points) data, hand it over
    # directly and drop this transpose.)
    x_t = jnp.pad(eval_points.astype(jnp.float32).T,
                  ((0, 0), (0, n_pad - n_points)))
    # Zero-pad the rank rows: freq = phase = scale = 0 => sin(0) = 0 and scale
    # 0, so pad rows produce exact zeros that are sliced off below.
    pad_r = r_pad - rank
    freq_p = jnp.pad(freq.astype(jnp.float32), ((0, pad_r), (0, 0)))
    phase_p = jnp.pad(phase.astype(jnp.float32), ((0, pad_r), (0, 0)))
    scale_p = jnp.pad(scale.astype(jnp.float32), ((0, pad_r), (0, 0)))

    cost = pl.CostEstimate(
        flops=6 * D * r_pad * n_pad,
        transcendentals=D * r_pad * n_pad,
        bytes_accessed=4 * (r_pad * n_pad + n_rblk * D * n_pad
                            + n_pblk * r_pad * (2 * D + 1)),
    )

    out = pl.pallas_call(
        _tph_fourier_kernel,
        out_shape=jax.ShapeDtypeStruct((r_pad, n_pad), jnp.float32),
        grid_spec=pltpu.PrefetchScalarGridSpec(
            num_scalar_prefetch=0,
            grid=(n_rblk, n_pblk),                       # point tiles innermost
            in_specs=[
                pl.BlockSpec((D, tp_eff), lambda r, i: (0, i)),     # points
                pl.BlockSpec((r_blk, D), lambda r, i: (r, 0)),      # freq
                pl.BlockSpec((r_blk, D), lambda r, i: (r, 0)),      # phase
                pl.BlockSpec((r_blk, 1), lambda r, i: (r, 0)),      # scale
            ],
            out_specs=pl.BlockSpec((r_blk, tp_eff), lambda r, i: (r, i)),
        ),
        compiler_params=pltpu.CompilerParams(
            dimension_semantics=("parallel", "parallel")),
        cost_estimate=cost,
    )(x_t, freq_p, phase_p, scale_p)

    res = out[:rank, :n_points]                        # (rank, n_points), lane-dense
    return res.T if transposed_output else res


def build_params(rank, D=2, max_freq=20, seed=42):
    """Deterministic replacement for the module __init__ (torch.randperm)."""
    n_basis = max_freq + (1 - max_freq % 2)            # 21 for max_freq=20
    nfreq = (n_basis - 1) // 2                         # 10
    n_total = n_basis ** D

    perm = np.asarray(jax.random.permutation(jax.random.PRNGKey(seed), n_total))
    sampled = perm[:rank]
    # row-major unravel == torch.meshgrid(indexing='ij') flattened
    tensor_idx = np.stack(np.unravel_index(sampled, (n_basis,) * D), axis=-1)  # (rank, D)

    norm = 1.0 / math.sqrt(math.pi)
    const_norm = 1.0 / (math.sqrt(2.0) * math.sqrt(math.pi))

    k = tensor_idx.astype(np.int64)                    # (rank, D)
    is_const = (k == 0)
    is_sin = (k >= 1) & (k <= nfreq)
    is_cos = k > nfreq
    freq = np.where(is_sin, k, np.where(is_cos, k - nfreq, 0)).astype(np.float32)
    phase = np.where(is_sin, 0.0, math.pi / 2).astype(np.float32)
    per_dim_scale = np.where(is_const, const_norm, norm)            # (rank, D)
    scale = np.prod(per_dim_scale, axis=1, keepdims=True).astype(np.float32)

    params = (jnp.asarray(freq), jnp.asarray(phase), jnp.asarray(scale))
    return tensor_idx, n_basis, params


def reference_numpy(eval_points, tensor_idx, n_basis):
    """Plain numpy mirror of the PyTorch forward, for verification."""
    nfreq = (n_basis - 1) // 2
    norm = 1.0 / np.sqrt(np.pi)
    const = 1.0 / (np.sqrt(2.0) * np.sqrt(np.pi))
    x = np.asarray(eval_points, dtype=np.float64)
    n_points, D = x.shape
    per_dim = []
    for d in range(D):
        xd = x[:, d]
        seq = np.arange(1, nfreq + 1)[:, None]                   # (nfreq, 1)
        sin_part = np.sin(seq * xd[None, :]) * norm              # (nfreq, n_points)
        cos_part = np.cos(seq * xd[None, :]) * norm
        const_part = np.ones((1, n_points)) * const
        B = np.concatenate([const_part, sin_part, cos_part], 0)  # (n_basis, n_points)
        per_dim.append(B[tensor_idx[:, d]])                      # (rank, n_points)
    res = np.ones_like(per_dim[0])
    for o in per_dim:
        res = res * o
    return res.T                                                 # (n_points, rank)


if __name__ == "__main__":
    D = 2
    max_freq = 20

    # Case 1: the module's small demo config (single rank block / point tile).
    rank = 16
    n_points = 10
    tensor_idx, n_basis, params = build_params(rank, D=D, max_freq=max_freq, seed=42)
    pts = jax.random.uniform(jax.random.PRNGKey(0), (n_points, D),
                             dtype=jnp.float32, minval=0.0, maxval=2.0 * math.pi)

    out = jax.block_until_ready(random_tph_fourier(pts, params, rank))
    ref = reference_numpy(np.asarray(pts), tensor_idx, n_basis)
    assert out.shape == (n_points, rank)
    assert np.allclose(np.asarray(out), ref, atol=1e-4, rtol=1e-4)

    # Native lane-dense (rank, n_points) path (no post-kernel transpose).
    out_nt = jax.block_until_ready(
        random_tph_fourier(pts, params, rank, transposed_output=False))
    assert out_nt.shape == (rank, n_points)
    assert np.allclose(np.asarray(out_nt), ref.T, atol=1e-4, rtol=1e-4)

    # Case 2: exercises rank tiling (3 rank blocks of 24) and a multi-step
    # point grid (3 point tiles), still at small shapes.
    rank2, n_points2 = 72, 300
    tensor_idx2, n_basis2, params2 = build_params(rank2, D=D, max_freq=max_freq, seed=7)
    pts2 = jax.random.uniform(jax.random.PRNGKey(1), (n_points2, D),
                              dtype=jnp.float32, minval=0.0, maxval=2.0 * math.pi)
    out2 = jax.block_until_ready(random_tph_fourier(pts2, params2, rank2))
    ref2 = reference_numpy(np.asarray(pts2), tensor_idx2, n_basis2)
    assert out2.shape == (n_points2, rank2)
    assert np.allclose(np.asarray(out2), ref2, atol=1e-4, rtol=1e-4)

    print("KERNEL_OK")
</pallas_src>

<mosaic_0001>
module attributes {stable_mosaic.version = 11 : i64} {
  func.func @_tph_fourier_kernel(%arg0: i32, %arg1: i32, %arg2: memref<2x128xf32, #tpu.memory_space<vmem>>, %arg3: memref<16x2xf32, #tpu.memory_space<vmem>>, %arg4: memref<16x2xf32, #tpu.memory_space<vmem>>, %arg5: memref<16x1xf32, #tpu.memory_space<vmem>>, %arg6: memref<16x128xf32, #tpu.memory_space<vmem>>) attributes {dimension_semantics = [#tpu.dimension_semantics<parallel>, #tpu.dimension_semantics<parallel>], iteration_bounds = array<i64: 1, 1>, scalar_prefetch = 0 : i64, scratch_operands = 0 : i64, tpu.core_type = #tpu.core_type<tc>, window_params = [{transform_indices = @transform_0, window_bounds = array<i64: 2, 128>}, {transform_indices = @transform_1, window_bounds = array<i64: 16, 2>}, {transform_indices = @transform_2, window_bounds = array<i64: 16, 2>}, {transform_indices = @transform_3, window_bounds = array<i64: 16, 1>}, {transform_indices = @transform_4, window_bounds = array<i64: 16, 128>}]} {
    %c0 = arith.constant 0 : index
    %c0_0 = arith.constant 0 : index
    %0 = vector.load %arg2[%c0, %c0_0] : memref<2x128xf32, #tpu.memory_space<vmem>>, vector<2x128xf32>
    %c0_1 = arith.constant 0 : index
    %c0_2 = arith.constant 0 : index
    %1 = vector.load %arg3[%c0_1, %c0_2] : memref<16x2xf32, #tpu.memory_space<vmem>>, vector<16x2xf32>
    %c0_3 = arith.constant 0 : index
    %c0_4 = arith.constant 0 : index
    %2 = vector.load %arg4[%c0_3, %c0_4] : memref<16x2xf32, #tpu.memory_space<vmem>>, vector<16x2xf32>
    %3 = vector.extract_strided_slice %0 {offsets = [0, 0], sizes = [1, 128], strides = [1, 1]} : vector<2x128xf32> to vector<1x128xf32>
    %4 = vector.extract_strided_slice %1 {offsets = [0, 0], sizes = [16, 1], strides = [1, 1]} : vector<16x2xf32> to vector<16x1xf32>
    %5 = vector.broadcast %3 : vector<1x128xf32> to vector<16x128xf32>
    %6 = vector.broadcast %4 : vector<16x1xf32> to vector<16x128xf32>
    %7 = arith.mulf %5, %6 : vector<16x128xf32>
    %8 = vector.extract_strided_slice %2 {offsets = [0, 0], sizes = [16, 1], strides = [1, 1]} : vector<16x2xf32> to vector<16x1xf32>
    %9 = vector.broadcast %8 : vector<16x1xf32> to vector<16x128xf32>
    %10 = arith.addf %7, %9 : vector<16x128xf32>
    %11 = math.sin %10 : vector<16x128xf32>
    %12 = vector.extract_strided_slice %0 {offsets = [1, 0], sizes = [1, 128], strides = [1, 1]} : vector<2x128xf32> to vector<1x128xf32>
    %13 = vector.extract_strided_slice %1 {offsets = [0, 1], sizes = [16, 1], strides = [1, 1]} : vector<16x2xf32> to vector<16x1xf32>
    %14 = vector.broadcast %12 : vector<1x128xf32> to vector<16x128xf32>
    %15 = vector.broadcast %13 : vector<16x1xf32> to vector<16x128xf32>
    %16 = arith.mulf %14, %15 : vector<16x128xf32>
    %17 = vector.extract_strided_slice %2 {offsets = [0, 1], sizes = [16, 1], strides = [1, 1]} : vector<16x2xf32> to vector<16x1xf32>
    %18 = vector.broadcast %17 : vector<16x1xf32> to vector<16x128xf32>
    %19 = arith.addf %16, %18 : vector<16x128xf32>
    %20 = math.sin %19 : vector<16x128xf32>
    %21 = arith.mulf %11, %20 : vector<16x128xf32>
    %c0_5 = arith.constant 0 : index
    %c0_6 = arith.constant 0 : index
    %22 = vector.load %arg5[%c0_5, %c0_6] : memref<16x1xf32, #tpu.memory_space<vmem>>, vector<16x1xf32>
    %23 = vector.broadcast %22 : vector<16x1xf32> to vector<16x128xf32>
    %24 = arith.mulf %21, %23 : vector<16x128xf32>
    %c0_7 = arith.constant 0 : index
    %c0_8 = arith.constant 0 : index
    %25 = vector.load %arg6[%c0_7, %c0_8] : memref<16x128xf32, #tpu.memory_space<vmem>>, vector<16x128xf32>
    tpu.vector_store %arg6[%c0_7, %c0_8], %24 {strides = array<i32>} : memref<16x128xf32, #tpu.memory_space<vmem>>, vector<16x128xf32>,
    return
  }
  func.func @transform_0(%arg0: i32, %arg1: i32) -> (i32, i32) {
    %c0_i32 = arith.constant 0 : i32
    %c0_i32_0 = arith.constant 0 : i32
    return %c0_i32, %arg1 : i32, i32
  }
  func.func @transform_1(%arg0: i32, %arg1: i32) -> (i32, i32) {
    %c0_i32 = arith.constant 0 : i32
    %c0_i32_0 = arith.constant 0 : i32
    return %arg0, %c0_i32 : i32, i32
  }
  func.func @transform_2(%arg0: i32, %arg1: i32) -> (i32, i32) {
    %c0_i32 = arith.constant 0 : i32
    %c0_i32_0 = arith.constant 0 : i32
    return %arg0, %c0_i32 : i32, i32
  }
  func.func @transform_3(%arg0: i32, %arg1: i32) -> (i32, i32) {
    %c0_i32 = arith.constant 0 : i32
    %c0_i32_0 = arith.constant 0 : i32
    return %arg0, %c0_i32 : i32, i32
  }
  func.func @transform_4(%arg0: i32, %arg1: i32) -> (i32, i32) {
    %c0_i32 = arith.constant 0 : i32
    return %arg0, %arg1 : i32, i32
  }
}

</mosaic_0001>

<bundles_post_ra>
// kernel: tpu_custom_call.1
= control target key start
LH: loop header
LB: loop body
LE: loop exit
PB: predicated region body
PF: predicated region fallthrough
CT: control target
= control target key end

     0   :  { %v615_v1 = vmov 1   ;;  %v616_v2 = vmov 0   ;;  %s942_s0 = inlined_call_operand.vmem [shape: f32[2,128], index: 0, kind: input, shape index: {}]   ;;  %s943_s1 = inlined_call_operand.vmem [shape: f32[16,2], index: 1, kind: input, shape index: {}]   ;;  %s944_s2 = inlined_call_operand.vmem [shape: f32[16,2], index: 2, kind: input, shape index: {}]   ;;  %s945_s3 = inlined_call_operand.vmem [shape: f32[16,1], index: 3, kind: input, shape index: {}]   ;;  %s946_s4 = inlined_call_operand.hbm [shape: f32[16,128], index: 4, kind: output, shape index: {}]  }
   0x1   :  { %v19_v0 = vld [vmem:[%s943_s1] sm:$0xff]  ;;  %569 = vset.pattern.permute.xlu1 %v615_v1  ;;  %568 = vset.pattern.permute.xlu0 %v616_v2 }
   0x2   :  { %264 = vperm.xlu1 %569, %v19_v0   ;;  %29 = vperm.xlu0 %568, %v19_v0  }
   0x3   :  { %9 = vsyncpa [#allocation3], 0  ;;  %v20_v3 = vld [vmem:[%s943_s1 + $0x8] sm:$0xff]  ;;  %v21_v4 = vld [vmem:[%s944_s2] sm:$0xff]  ;;  %v23_v8 = vlaneseq  ;;  %v617_v59 = vmov 683565275  }
   0x4   :  { %v22_v5 = vld [vmem:[%s944_s2 + $0x8] sm:$0xff]  ;;  %v493_v7 = vld [vmem:[%s945_s3] sm:$0xff]  ;;  %v618_v61 = vmov 2475754826   ;;  %v619_v0 = vmov 2131351028  }
   0x5   :  { %v494_v6 = vld [vmem:[%s945_s3 + $0x8] sm:$0xff]  ;;  %v24_v9 = vshrl.u32 %v23_v8, 7  ;;  %v18_v12 = vld [vmem:[%s942_s0] sm:$0x3]  ;;  %s623_s0 = smov [#allocation2]  }
   0x6   :  { %268 = vperm.xlu1 %569, %v20_v3   ;;  %34 = vperm.xlu0 %568, %v20_v3   ;;  %s514_s3 = sshll.u32 %s623_s0, 4  ;;  %s515_s3 = int_to_ptr.vmem [resolvable:$true] %s514_s3 }
   0x7   :  { %v25_v10 = vsub.s32 0, %v24_v9  ;;  %v261_v15 = vsub.s32 1, %v24_v9  ;;  %s591_s27 = scalar_lea.vmem %s515_s3, 256  ;;  %p596_p1 = scmp.lt.s32.totalorder %s515_s3, %s515_s3 }
   0x8   :  { %p592_p0 = scmp.ne.s32.totalorder %s515_s3, %s591_s27  ;;  %p597_p2 = scmp.lt.s32.totalorder %s591_s27, %s591_s27 }
   0x9   :  { %v26_v14 = vrot.slane %v18_v12, %v25_v10  ;;  %v262_v19 = vrot.slane %v18_v12, %v261_v15 }
   0xa   :  { %570 = vset.pattern.permute.xlu1 %v616_v2  ;;  %41 = vperm.xlu0 %568, %v21_v4   ;;  %p598_p3 = por %p597_p2, %p596_p1 }
   0xb   :  { %46 = vperm.xlu1 %570, %v22_v5  }
   0xc   :  { %p599_p4 = pnand %p598_p3, %p592_p0 }
   0xe   :  { %571 = vset.pattern.permute.xlu0 %v615_v1 }
   0xf   :  { %572 = vset.pattern.permute.xlu1 %v615_v1  ;;  %274 = vperm.xlu0 %571, %v21_v4   ;;  %v621_v4 = vmov 920167782  }
  0x10   :  { %278 = vperm.xlu1 %572, %v22_v5  }
  0x13   :  { %574 = vset.pattern.permute.xlu0 %v616_v2 }
  0x14   :  { %573 = vset.pattern.permute.xlu1 %v616_v2  ;;  %502 = vperm.xlu0 %574, %v494_v6   ;;  %v620_v2 = vmov 2102212464  }
  0x15   :  { %497 = vperm.xlu1 %573, %v493_v7  }
  0x81   :  { %v265_v11 = vpop.permute.xlu1 %264  ;;  %v30_v13 = vpop.permute.xlu0 %29 }
  0x82   :  { %v37_v18 = vmul.f32 %v30_v13, %v26_v14  ;;  %v271_v27 = vmul.f32 %v265_v11, %v262_v19  ;;  %v622_v11 = vmov 1326507024  }
  0x85   :  { %v269_v16 = vpop.permute.xlu1 %268  ;;  %v35_v17 = vpop.permute.xlu0 %34 }
  0x86   :  { %v38_v20 = vmul.f32 %v35_v17, %v26_v14  ;;  %v272_v38 = vmul.f32 %v269_v16, %v262_v19 }
  0x89   :  { %v42_v21 = vpop.permute.xlu0 %41 }
  0x8a   :  { %v672_v22 = vadd.f32 %v42_v21, %v37_v18  ;;  %v47_v23 = vpop.permute.xlu1 %46 }
  0x8b   :  { %v674_v24 = vadd.f32 %v47_v23, %v38_v20 }
  0x8c   :  { %v51_v25 = vand.u32 2147483647, %v672_v22  ;;  %v54_v26 = vand.u32 2139095040, %v672_v22 }
  0x8d   :  { %v155_v28 = vand.u32 2147483647, %v674_v24  ;;  %v158_v29 = vand.u32 2139095040, %v674_v24 }
  0x8e   :  { %v55_v30 = vshrl.u32 %v54_v26, 23  ;;  %v58_v31 = vand.u32 8388607, %v51_v25  ;;  %v275_v32 = vpop.permute.xlu0 %274 }
  0x8f   :  { %v159_v33 = vshrl.u32 %v158_v29, 23  ;;  %v162_v34 = vand.u32 8388607, %v155_v28  ;;  %v684_v35 = vadd.f32 %v275_v32, %v271_v27  ;;  %v279_v37 = vpop.permute.xlu1 %278 }
  0x90   :  { %v525_v36 = vadd.s32 4294967169, %v55_v30  ;;  %v59_v39 = vor.u32 8388608, %v58_v31  ;;  %v688_v46 = vadd.f32 %v279_v37, %v272_v38 }
  0x91   :  { %v529_v40 = vadd.s32 4294967169, %v159_v33  ;;  %v163_v42 = vor.u32 8388608, %v162_v34  ;;  %v286_v43 = vand.u32 2139095040, %v684_v35  ;;  %v283_v45 = vand.u32 2147483647, %v684_v35 }
  0x92   :  { %v61_v41 = vadd.s32 1, %v525_v36  ;;  %v690_v49 = vshll.u32 %v59_v39, 8  ;;  %v390_v57 = vand.u32 2139095040, %v688_v46 }
  0x93   :  { %v165_v44 = vadd.s32 1, %v529_v40  ;;  %v287_v47 = vshrl.u32 %v286_v43, 23  ;;  %v692_v53 = vshll.u32 %v163_v42, 8  ;;  %v700_v56 = vand.u32 8388607, %v283_v45 }
  0x94   :  { %vm62_vm0 = vcmp.gt.s32.totalorder %v61_v41, 0 }
  0x95   :  { %v63_v48 = vsel %vm62_vm0, %v61_v41, 0  ;;  %vm166_vm1 = vcmp.gt.s32.totalorder %v165_v44, 0  ;;  %v696_v55 = vadd.s32 4294967169, %v287_v47 }
  0x96   :  { %v64_v50 = vshrl.u32 %v63_v48, 5  ;;  %v65_v51 = vand.u32 31, %v63_v48  ;;  %v167_v52 = vsel %vm166_vm1, %v165_v44, 0 }
  0x97   :  { %v694_v54 = vshrl.u32 %v167_v52, 5  ;;  %v169_v63 = vand.u32 31, %v167_v52 }
  0x98   :  { %v66_v58 = vsub.s32 32, %v65_v51  ;;  %v68_v60 = vshll.u32 %v617_v59, %v65_v51  ;;  %v71_v62 = vshll.u32 %v618_v61, %v65_v51  ;;  %v74_v1 = vshll.u32 %v619_v0, %v65_v51 }
  0x99   :  { %v77_v3 = vshll.u32 %v620_v2, %v65_v51  ;;  %v80_v5 = vshll.u32 %v621_v4, %v65_v51  ;;  %vm83_vm2 = vcmp.lt.s32.totalorder %v64_v50, 1  ;;  %vm84_vm3 = vcmp.lt.s32.totalorder %v64_v50, 2 }
  0x9a   :  { %v69_v6 = vshrl.u32 %v618_v61, %v66_v58  ;;  %v72_v7 = vshrl.u32 %v619_v0, %v66_v58  ;;  %v75_v8 = vshrl.u32 %v620_v2, %v66_v58  ;;  %v67_v9 = vshrl.u32 %v617_v59, %v66_v58 }
  0x9b   :  { %v78_v10 = vshrl.u32 %v621_v4, %v66_v58  ;;  %v81_v12 = vshrl.u32 %v622_v11, %v66_v58  ;;  %vm85_vm4 = vcmp.lt.s32.totalorder %v64_v50, 3  ;;  %v170_v16 = vsub.s32 32, %v169_v63 }
  0x9c   :  { %v70_v13 = vor.u32 %v69_v6, %v68_v60  ;;  %v73_v14 = vor.u32 %v72_v7, %v71_v62  ;;  %v76_v15 = vor.u32 %v75_v8, %v74_v1  ;;  %vm86_vm5 = vcmp.lt.s32.totalorder %v64_v50, 4 }
  0x9d   :  { %v79_v17 = vor.u32 %v78_v10, %v77_v3  ;;  %v82_v18 = vor.u32 %v81_v12, %v80_v5  ;;  %v172_v19 = vshll.u32 %v617_v59, %v169_v63  ;;  %v175_v31 = vshll.u32 %v618_v61, %v169_v63 }
  0x9e   :  { %v87_v20 = vsel %vm83_vm2, %v67_v9, %v70_v13  ;;  %v88_v21 = vsel %vm86_vm5, %v76_v15, 2102212464  ;;  %v91_v23 = vsel %vm83_vm2, %v70_v13, %v73_v14  ;;  %v95_v26 = vsel %vm83_vm2, %v73_v14, %v76_v15 }
  0x9f   :  { %v89_v27 = vsel %vm85_vm4, %v73_v14, %v88_v21  ;;  %v92_v29 = vsel %vm86_vm5, %v79_v17, 920167782  ;;  %v96_v30 = vsel %vm86_vm5, %v82_v18, 1326507024  ;;  %v171_v34 = vshrl.u32 %v617_v59, %v170_v16 }
  0xa0   :  { %v93_v32 = vsel %vm85_vm4, %v76_v15, %v92_v29  ;;  %v97_v33 = vsel %vm85_vm4, %v79_v17, %v96_v30  ;;  %v173_v36 = vshrl.u32 %v618_v61, %v170_v16  ;;  %v90_v37 = vsel %vm84_vm3, %v87_v20, %v89_v27 }
  0xa1   :  { %v94_v38 = vsel %vm84_vm3, %v91_v23, %v93_v32  ;;  %v98_v39 = vsel %vm84_vm3, %v95_v26, %v97_v33  ;;  %v176_v40 = vshrl.u32 %v619_v0, %v170_v16  ;;  %v178_v51 = vshll.u32 %v619_v0, %v169_v63 }
  0xa2   :  { %v729_v41 = vmul.u32.u64.low %v690_v49, %v98_v39  ;;  %v730_v42 = vmul.u32.u64.high %v690_v49, %v98_v39, %v729_v41  ;;  %v733_v43 = vmul.u32.u64.low %v690_v49, %v94_v38  ;;  %v734_v44 = vmul.u32.u64.high %v690_v49, %v94_v38, %v733_v43 }
  0xa3   :  { %v174_v47 = vor.u32 %v173_v36, %v172_v19  ;;  %v177_v48 = vor.u32 %v176_v40, %v175_v31  ;;  %v179_v52 = vshrl.u32 %v620_v2, %v170_v16  ;;  %v106_v50 = vmul.u32 %v690_v49, %v90_v37 }
  0xa4   :  { %v181_v58 = vshll.u32 %v620_v2, %v169_v63  ;;  %v182_v60 = vshrl.u32 %v621_v4, %v170_v16  ;;  %v185_v62 = vshrl.u32 %v622_v11, %v170_v16  ;;  %v184_v3 = vshll.u32 %v621_v4, %v169_v63 }
  0xa5   :  { %v180_v1 = vor.u32 %v179_v52, %v178_v51  ;;  %vm187_vm6 = vcmp.lt.s32.totalorder %v694_v54, 1  ;;  %vm188_vm7 = vcmp.lt.s32.totalorder %v694_v54, 2  ;;  %vm108_vm8 = vc.u32 %v730_v42, %v733_v43 }
  0xa6   :  { %v109_v5 = vadd.s32 1, %v734_v44  ;;  %v183_v6 = vor.u32 %v182_v60, %v181_v58  ;;  %vm189_vm9 = vcmp.lt.s32.totalorder %v694_v54, 3  ;;  %v186_v49 = vor.u32 %v185_v62, %v184_v3 }
  0xa7   :  { %vm190_vm10 = vcmp.lt.s32.totalorder %v694_v54, 4  ;;  %v191_v7 = vsel %vm187_vm6, %v171_v34, %v174_v47  ;;  %v195_v8 = vsel %vm187_vm6, %v174_v47, %v177_v48  ;;  %v199_v12 = vsel %vm187_vm6, %v177_v48, %v180_v1 }
  0xa8   :  { %v110_v9 = vsel %vm108_vm8, %v109_v5, %v734_v44  ;;  %v192_v63 = vsel %vm190_vm10, %v180_v1, 2102212464  ;;  %v196_v10 = vsel %vm190_vm10, %v183_v6, 920167782  ;;  %v200_v16 = vsel %vm190_vm10, %v186_v49, 1326507024 }
  0xa9   :  { %v111_v13 = vadd.s32 %v110_v9, %v106_v50  ;;  %v193_v14 = vsel %vm189_vm9, %v177_v48, %v192_v63  ;;  %v197_v15 = vsel %vm189_vm9, %v180_v1, %v196_v10  ;;  %v201_v18 = vsel %vm189_vm9, %v183_v6, %v200_v16 }
  0xaa   :  { %v198_v17 = vsel %vm188_vm7, %v195_v8, %v197_v15  ;;  %v293_v19 = vadd.s32 1, %v696_v55  ;;  %v391_v20 = vshrl.u32 %v390_v57, 23  ;;  %v202_v23 = vsel %vm188_vm7, %v199_v12, %v201_v18 }
  0xab   :  { %v112_v21 = vadd.s32 536870912, %v111_v13  ;;  %v760_v26 = vmul.u32.u64.low %v692_v53, %v198_v17  ;;  %v761_v27 = vmul.u32.u64.high %v692_v53, %v198_v17, %v760_v26  ;;  %v194_v29 = vsel %vm188_vm7, %v191_v7, %v193_v14 }
  0xac   :  { %v767_v30 = vmul.u32.u64.low %v692_v53, %v202_v23  ;;  %v768_v31 = vmul.u32.u64.high %v692_v53, %v202_v23, %v767_v30  ;;  %vm294_vm11 = vcmp.gt.s32.totalorder %v293_v19, 0  ;;  %v210_v34 = vmul.u32 %v692_v53, %v194_v29 }
  0xad   :  { %v770_v55 = vshrl.u32 %v112_v21, 30  ;;  %v295_v57 = vsel %vm294_vm11, %v293_v19, 0  ;;  %v213_v36 = vadd.s32 1, %v761_v27  ;;  %v291_v37 = vor.u32 8388608, %v700_v56 }
  0xae   :  { %v297_v32 = vand.u32 31, %v295_v57  ;;  %vm212_vm12 = vc.u32 %v768_v31, %v760_v26  ;;  %v296_v54 = vshrl.u32 %v295_v57, 5  ;;  %v537_v39 = vadd.s32 4294967169, %v391_v20 }
  0xaf   :  { %v114_v33 = vshll.u32 %v770_v55, 30  ;;  %v214_v41 = vsel %vm212_vm12, %v213_v36, %v761_v27  ;;  %v331_v63 = vshll.u32 %v291_v37, 8  ;;  %vm53_vm10 = vcmp.lt.s32.totalorder %v672_v22, 0 }
  0xb0   :  { %v298_v38 = vsub.s32 32, %v297_v32  ;;  %v300_v44 = vshll.u32 %v617_v59, %v297_v32  ;;  %v303_v47 = vshll.u32 %v618_v61, %v297_v32  ;;  %v215_v48 = vadd.s32 %v214_v41, %v210_v34 }
  0xb1   :  { %v778_v40 = vsub.s32 %v111_v13, %v114_v33  ;;  %v306_v56 = vshll.u32 %v619_v0, %v297_v32  ;;  %v309_v58 = vshll.u32 %v620_v2, %v297_v32  ;;  %v312_v5 = vshll.u32 %v621_v4, %v297_v32 }
  0xb2   :  { %v301_v53 = vshrl.u32 %v618_v61, %v298_v38  ;;  %v304_v51 = vshrl.u32 %v619_v0, %v298_v38  ;;  %v307_v50 = vshrl.u32 %v620_v2, %v298_v38  ;;  %v310_v60 = vshrl.u32 %v621_v4, %v298_v38 }
  0xb3   :  { %v117_v52 = vsub.s32 0, %v778_v40  ;;  %v216_v62 = vadd.s32 536870912, %v215_v48  ;;  %v313_v8 = vshrl.u32 %v622_v11, %v298_v38  ;;  %vm315_vm13 = vcmp.lt.s32.totalorder %v296_v54, 1 }
  0xb4   :  { %v302_v1 = vor.u32 %v301_v53, %v300_v44  ;;  %v305_v3 = vor.u32 %v304_v51, %v303_v47  ;;  %v308_v49 = vor.u32 %v307_v50, %v306_v56  ;;  %v311_v7 = vor.u32 %v310_v60, %v309_v58 }
  0xb5   :  { %v526_v6 = vmin.u32 %v117_v52, %v778_v40  ;;  %v793_v9 = vshrl.u32 %v216_v62, 30  ;;  %v397_v10 = vadd.s32 1, %v537_v39  ;;  %v314_v13 = vor.u32 %v313_v8, %v312_v5 }
  0xb6   :  { %vm316_vm14 = vcmp.lt.s32.totalorder %v296_v54, 2  ;;  %vm318_vm15 = vcmp.lt.s32.totalorder %v296_v54, 4  ;;  %vm317_vm0 = vcmp.lt.s32.totalorder %v296_v54, 3  ;;  %v323_v15 = vsel %vm315_vm13, %v302_v1, %v305_v3 }
  0xb7   :  { %v119_v12 = vclz %v526_v6  ;;  %v218_v14 = vshll.u32 %v793_v9, 30  ;;  %v324_v16 = vsel %vm318_vm15, %v311_v7, 920167782  ;;  %v320_v18 = vsel %vm318_vm15, %v308_v49, 2102212464 }
  0xb8   :  { %v325_v19 = vsel %vm317_vm0, %v308_v49, %v324_v16  ;;  %v327_v20 = vsel %vm315_vm13, %v305_v3, %v308_v49  ;;  %v299_v23 = vshrl.u32 %v617_v59, %v298_v38  ;;  %v328_v29 = vsel %vm318_vm15, %v314_v13, 1326507024 }
  0xb9   :  { %v527_v17 = vadd.s32 4294967294, %v119_v12  ;;  %v799_v21 = vsub.s32 %v215_v48, %v218_v14  ;;  %v326_v27 = vsel %vm316_vm14, %v323_v15, %v325_v19  ;;  %v329_v30 = vsel %vm317_vm0, %v311_v7, %v328_v29 }
  0xba   :  { %v804_v57 = vmul.u32.u64.low %v331_v63, %v326_v27  ;;  %v805_v32 = vmul.u32.u64.high %v331_v63, %v326_v27, %v804_v57  ;;  %v319_v34 = vsel %vm315_vm13, %v299_v23, %v302_v1  ;;  %v321_v36 = vsel %vm317_vm0, %v305_v3, %v320_v18 }
  0xbb   :  { %vm528_vm1 = vcmp.lt.s32.totalorder %v527_v17, 0  ;;  %v330_v37 = vsel %vm316_vm14, %v327_v20, %v329_v30  ;;  %vm398_vm2 = vcmp.gt.s32.totalorder %v397_v10, 0  ;;  %v221_v38 = vsub.s32 0, %v799_v21 }
  0xbc   :  { %v122_v33 = vsel %vm528_vm1, 0, %v527_v17  ;;  %v812_v41 = vmul.u32.u64.low %v331_v63, %v330_v37  ;;  %v813_v44 = vmul.u32.u64.high %v331_v63, %v330_v37, %v812_v41  ;;  %v399_v47 = vsel %vm398_vm2, %v397_v10, 0 }
  0xbd   :  { %v127_v39 = vsub.s32 4294967266, %v122_v33  ;;  %v322_v48 = vsel %vm316_vm14, %v319_v34, %v321_v36  ;;  %v341_v53 = vadd.s32 1, %v805_v32  ;;  %v387_v51 = vand.u32 2147483647, %v688_v46 }
  0xbe   :  { %v123_v56 = vsub.s32 32, %v122_v33  ;;  %v401_v52 = vand.u32 31, %v399_v47  ;;  %v107_v50 = vadd.s32 %v733_v43, %v730_v42  ;;  %v530_v60 = vmin.u32 %v221_v38, %v799_v21 }
  0xbf   :  { %v128_v58 = vadd.s32 127, %v127_v39  ;;  %v338_v62 = vmul.u32 %v331_v63, %v322_v48  ;;  %vm340_vm3 = vc.u32 %v813_v44, %v804_v57  ;;  %v394_v3 = vand.u32 8388607, %v387_v51 }
  0xc0   :  { %v402_v1 = vsub.s32 32, %v401_v52  ;;  %v342_v54 = vsel %vm340_vm3, %v341_v53, %v805_v32  ;;  %v125_v5 = vshrl.u32 %v107_v50, %v123_v56  ;;  %v124_v7 = vshll.u32 %v778_v40, %v122_v33 }
  0xc1   :  { %v343_v6 = vadd.s32 %v342_v54, %v338_v62  ;;  %v129_v49 = vshll.u32 %v128_v58, 23  ;;  %v223_v8 = vclz %v530_v60  ;;  %v395_v10 = vor.u32 8388608, %v394_v3 }
  0xc2   :  { %v405_v43 = vshrl.u32 %v618_v61, %v402_v1  ;;  %v400_v63 = vshrl.u32 %v399_v47, 5  ;;  %v408_v12 = vshrl.u32 %v619_v0, %v402_v1  ;;  %v126_v13 = vor.u32 %v125_v5, %v124_v7 }
  0xc3   :  { %v344_v42 = vadd.s32 536870912, %v343_v6  ;;  %v404_v15 = vshll.u32 %v617_v59, %v401_v52  ;;  %v411_v16 = vshrl.u32 %v620_v2, %v402_v1  ;;  %v130_v17 = vor.u32 4788187, %v129_v49 }
  0xc4   :  { %v407_v18 = vshll.u32 %v618_v61, %v401_v52  ;;  %v413_v40 = vshll.u32 %v620_v2, %v401_v52  ;;  %v414_v19 = vshrl.u32 %v621_v4, %v402_v1  ;;  %v531_v20 = vadd.s32 4294967294, %v223_v8 }
  0xc5   :  { %v829_v14 = vshrl.u32 %v344_v42, 30  ;;  %v406_v27 = vor.u32 %v405_v43, %v404_v15  ;;  %v410_v29 = vshll.u32 %v619_v0, %v401_v52  ;;  %v416_v33 = vshll.u32 %v621_v4, %v401_v52 }
  0xc6   :  { %v409_v30 = vor.u32 %v408_v12, %v407_v18  ;;  %v415_v32 = vor.u32 %v414_v19, %v413_v40  ;;  %v417_v34 = vshrl.u32 %v622_v11, %v402_v1  ;;  %v435_v39 = vshll.u32 %v395_v10, 8 }
  0xc7   :  { %v346_v23 = vshll.u32 %v829_v14, 30  ;;  %v412_v37 = vor.u32 %v411_v16, %v410_v29  ;;  %v131_v61 = vand.u32 2147483647, %v130_v17  ;;  %vm419_vm4 = vcmp.lt.s32.totalorder %v400_v63, 1 }
  0xc8   :  { %v418_v38 = vor.u32 %v417_v34, %v416_v33  ;;  %vm420_vm5 = vcmp.lt.s32.totalorder %v400_v63, 2  ;;  %v133_v2 = vcvt.s32.f32 %v126_v13  ;;  %vm532_vm6 = vcmp.lt.s32.totalorder %v531_v20, 0 }
  0xc9   :  { %v347_v36 = vsub.s32 %v343_v6, %v346_v23  ;;  %vm422_vm7 = vcmp.lt.s32.totalorder %v400_v63, 4  ;;  %v403_v47 = vshrl.u32 %v617_v59, %v402_v1  ;;  %vm421_vm8 = vcmp.lt.s32.totalorder %v400_v63, 3 }
  0xca   :  { %v427_v0 = vsel %vm419_vm4, %v406_v27, %v409_v30  ;;  %v428_v48 = vsel %vm422_vm7, %v415_v32, 920167782  ;;  %v424_v53 = vsel %vm422_vm7, %v412_v37, 2102212464  ;;  %v431_v56 = vsel %vm419_vm4, %v409_v30, %v412_v37 }
  0xcb   :  { %v349_v41 = vsub.s32 0, %v347_v36  ;;  %v429_v11 = vsel %vm421_vm8, %v412_v37, %v428_v48  ;;  %v134_v52 = vmul.f32 %v133_v2, %v131_v61  ;;  %v226_v50 = vsel %vm532_vm6, 0, %v531_v20 }
  0xcc   :  { %v430_v58 = vsel %vm420_vm5, %v427_v0, %v429_v11  ;;  %v432_v60 = vsel %vm422_vm7, %v418_v38, 1326507024  ;;  %v423_v54 = vsel %vm419_vm4, %v403_v47, %v406_v27  ;;  %v425_v5 = vsel %vm421_vm8, %v409_v30, %v424_v53 }
  0xcd   :  { %v534_v4 = vmin.u32 %v349_v41, %v347_v36  ;;  %v433_v3 = vsel %vm421_vm8, %v415_v32, %v432_v60  ;;  %v846_v1 = vmul.u32.u64.low %v435_v39, %v430_v58  ;;  %v847_v6 = vmul.u32.u64.high %v435_v39, %v430_v58, %v846_v1 }
  0xce   :  { %v434_v59 = vsel %vm420_vm5, %v431_v56, %v433_v3  ;;  %v231_v49 = vsub.s32 4294967266, %v226_v50  ;;  %v135_v43 = vxor.u32 2147483648, %v134_v52  ;;  %v426_v10 = vsel %vm420_vm5, %v423_v54, %v425_v5 }
  0xcf   :  { %v351_v62 = vclz %v534_v4  ;;  %v850_v8 = vmul.u32.u64.low %v435_v39, %v434_v59  ;;  %v851_v42 = vmul.u32.u64.high %v435_v39, %v434_v59, %v850_v8  ;;  %v445_v13 = vadd.s32 1, %v847_v6 }
  0xd0   :  { %v232_v15 = vadd.s32 127, %v231_v49  ;;  %v339_v16 = vadd.s32 %v804_v57, %v813_v44  ;;  %v136_v40 = vsel %vm53_vm10, %v135_v43, %v134_v52  ;;  %v227_v19 = vsub.s32 32, %v226_v50 }
  0xd1   :  { %v535_v7 = vadd.s32 4294967294, %v351_v62  ;;  %v442_v20 = vmul.u32 %v435_v39, %v426_v10  ;;  %vm444_vm11 = vc.u32 %v851_v42, %v846_v1  ;;  %vm865_vm12 = vcmp.le.f32.partialorder %v51_v25, 0.7853982 }
  0xd2   :  { %v446_v29 = vsel %vm444_vm11, %v445_v13, %v847_v6  ;;  %v211_v44 = vadd.s32 %v760_v26, %v768_v31  ;;  %v233_v32 = vshll.u32 %v232_v15, 23  ;;  %v137_v38 = vsub.s32 4, %v770_v55 }
  0xd3   :  { %vm536_vm9 = vcmp.lt.s32.totalorder %v535_v7, 0  ;;  %v447_v57 = vadd.s32 %v446_v29, %v442_v20  ;;  %v228_v25 = vshll.u32 %v799_v21, %v226_v50  ;;  %v369_v53 = vsub.s32 4, %v829_v14 }
  0xd4   :  { %v354_v12 = vsel %vm536_vm9, 0, %v535_v7  ;;  %v229_v39 = vshrl.u32 %v211_v44, %v227_v19  ;;  %v234_v41 = vor.u32 4788187, %v233_v32  ;;  %v138_v4 = vsel %vm53_vm10, %v137_v38, %v770_v55 }
  0xd5   :  { %v355_v17 = vsub.s32 32, %v354_v12  ;;  %v359_v18 = vsub.s32 4294967266, %v354_v12  ;;  %v356_v63 = vshll.u32 %v347_v36, %v354_v12  ;;  %v139_v36 = vsel %vm865_vm12, %v672_v22, %v136_v40 }
  0xd6   :  { %v448_v37 = vadd.s32 536870912, %v447_v57  ;;  %575 = vcosq.f32 %v139_v36  ;;  %v230_v0 = vor.u32 %v229_v39, %v228_v25  ;;  %v235_v56 = vand.u32 2147483647, %v234_v41 }
  0xd7   :  { %v357_v23 = vshrl.u32 %v339_v16, %v355_v17  ;;  %v360_v27 = vadd.s32 127, %v359_v18  ;;  %577 = vsinq.f32 %v139_v36  ;;  %vm285_vm13 = vcmp.lt.s32.totalorder %v684_v35, 0 }
  0xd8   :  { %v876_v2 = vshrl.u32 %v448_v37, 30  ;;  %v140_v50 = vsel %vm865_vm12, 0, %v138_v4  ;;  %v237_v58 = vcvt.s32.f32 %v230_v0  ;;  %vm888_vm14 = vcmp.le.f32.partialorder %v283_v45, 0.7853982 }
  0xd9   :  { %v358_v33 = vor.u32 %v357_v23, %v356_v63  ;;  %v361_v34 = vshll.u32 %v360_v27, 23  ;;  %v370_v55 = vsel %vm285_vm13, %v369_v53, %v829_v14  ;;  %v144_v59 = vadd.s32 3, %v140_v50 }
  0xda   :  { %v450_v31 = vshll.u32 %v876_v2, 30  ;;  %v238_v5 = vmul.f32 %v237_v58, %v235_v56  ;;  %v372_v49 = vsel %vm888_vm14, 0, %v370_v55  ;;  %vm157_vm0 = vcmp.lt.s32.totalorder %v674_v24, 0 }
  0xdb   :  { %v362_v61 = vor.u32 4788187, %v361_v34  ;;  %v365_v26 = vcvt.s32.f32 %v358_v33  ;;  %v145_v10 = vand.u32 3, %v144_v59  ;;  %v376_v12 = vadd.s32 3, %v372_v49 }
  0xdc   :  { %v451_v11 = vsub.s32 %v447_v57, %v450_v31  ;;  %v239_v43 = vxor.u32 2147483648, %v238_v5  ;;  %v443_v16 = vadd.s32 %v846_v1, %v851_v42  ;;  %vm143_vm3 = vweird.f32 %v672_v22 }
  0xdd   :  { %v363_v47 = vand.u32 2147483647, %v362_v61  ;;  %vm147_vm1 = vcmp.eq.s32.totalorder %v145_v10, 0  ;;  %v377_v19 = vand.u32 3, %v376_v12  ;;  %vm150_vm2 = vcmp.eq.s32.totalorder %v145_v10, 2  ;;  %v503_v12 = vpop.permute.xlu0 %502 }
  0xde   :  { %v453_v52 = vsub.s32 0, %v451_v11  ;;  %v240_v40 = vsel %vm157_vm0, %v239_v43, %v238_v5  ;;  %vm906_vm4 = vcmp.le.f32.partialorder %v155_v28, 0.7853982  ;;  %vm146_vm5 = vcmp.lt.s32.totalorder %v145_v10, 2 }
  0xdf   :  { %v366_v48 = vmul.f32 %v365_v26, %v363_v47  ;;  %v243_v33 = vsel %vm906_vm4, %v674_v24, %v240_v40  ;;  %vm382_vm6 = vcmp.eq.s32.totalorder %v377_v19, 2  ;;  %vm379_vm7 = vcmp.eq.s32.totalorder %v377_v19, 0  ;;  %v498_v47 = vpop.permute.xlu1 %497 }
  0xe0   :  { %v538_v3 = vmin.u32 %v453_v52, %v451_v11  ;;  %v576_v45 = vpop.eup %575  ;;  %vm375_vm8 = vweird.f32 %v684_v35  ;;  %vm378_vm9 = vcmp.lt.s32.totalorder %v377_v19, 2  ;;  %v241_v61 = vsub.s32 4, %v793_v9 }
  0xe1   :  { %v367_v21 = vxor.u32 2147483648, %v366_v48  ;;  %v578_v7 = vpop.eup %577  ;;  %v151_v15 = vxor.u32 2147483648, %v576_v45  ;;  %v473_v4 = vsub.s32 4, %v876_v2  ;;  %vm389_vm10 = vcmp.lt.s32.totalorder %v688_v46, 0 }
  0xe2   :  { %v455_v6 = vclz %v538_v3  ;;  %v148_v13 = vxor.u32 2147483648, %v578_v7  ;;  %vm388_vm11 = vcmp.le.f32.partialorder %v387_v51, 0.7853982 }
  0xe3   :  { %v368_v62 = vsel %vm285_vm13, %v367_v21, %v366_v48  ;;  %v152_v30 = vsel %vm150_vm2, %v151_v15, %v578_v7  ;;  %v474_v21 = vsel %vm389_vm10, %v473_v4, %v876_v2  ;;  %vm247_vm2 = vweird.f32 %v674_v24 }
  0xe4   :  { %v371_v54 = vsel %vm888_vm14, %v684_v35, %v368_v62  ;;  %v539_v8 = vadd.s32 4294967294, %v455_v6  ;;  %v149_v29 = vsel %vm147_vm1, %v576_v45, %v148_v13  ;;  %v242_v35 = vsel %vm157_vm0, %v241_v61, %v793_v9 }
  0xe5   :  { %579 = vcosq.f32 %v371_v54  ;;  %v153_v37 = vsel %vm146_vm5, %v149_v29, %v152_v30  ;;  %v244_v22 = vsel %vm906_vm4, 0, %v242_v35  ;;  %v476_v9 = vsel %vm388_vm11, 0, %v474_v21 }
  0xe6   :  { %581 = vsinq.f32 %v371_v54  ;;  %vm540_vm15 = vcmp.lt.s32.totalorder %v539_v8, 0  ;;  %v154_v26 = vsel %vm143_vm3, nan, %v153_v37  ;;  %v248_v50 = vadd.s32 3, %v244_v22 }
  0xe7   :  { %v458_v14 = vsel %vm540_vm15, 0, %v539_v8  ;;  %583 = vcosq.f32 %v243_v33  ;;  %v480_v62 = vadd.s32 3, %v476_v9  ;;  %vm479_vm3 = vweird.f32 %v688_v46 }
  0xe8   :  { %v459_v17 = vsub.s32 32, %v458_v14  ;;  %v463_v18 = vsub.s32 4294967266, %v458_v14  ;;  %v460_v20 = vshll.u32 %v451_v11, %v458_v14  ;;  %585 = vsinq.f32 %v243_v33 }
  0xe9   :  { %v249_v55 = vand.u32 3, %v248_v50  ;;  %v481_v51 = vand.u32 3, %v480_v62 }
  0xea   :  { %v461_v63 = vshrl.u32 %v443_v16, %v459_v17  ;;  %v464_v23 = vadd.s32 127, %v463_v18 }
  0xeb   :  { %vm251_vm12 = vcmp.eq.s32.totalorder %v249_v55, 0  ;;  %vm254_vm13 = vcmp.eq.s32.totalorder %v249_v55, 2  ;;  %vm250_vm14 = vcmp.lt.s32.totalorder %v249_v55, 2  ;;  %vm486_vm15 = vcmp.eq.s32.totalorder %v481_v51, 2 }
  0xec   :  { %v462_v42 = vor.u32 %v461_v63, %v460_v20  ;;  %v465_v44 = vshll.u32 %v464_v23, 23  ;;  %vm483_vm0 = vcmp.eq.s32.totalorder %v481_v51, 0  ;;  %vm482_vm1 = vcmp.lt.s32.totalorder %v481_v51, 2 }
  0xee   :  { %v466_v36 = vor.u32 4788187, %v465_v44  ;;  %v469_v25 = vcvt.s32.f32 %v462_v42 }
  0xef   :  { %v580_v27 = vpop.eup %579 }
  0xf0   :  { %v582_v57 = vpop.eup %581  ;;  %v383_v32 = vxor.u32 2147483648, %v580_v27  ;;  %v467_v38 = vand.u32 2147483647, %v466_v36 }
  0xf1   :  { %v380_v34 = vxor.u32 2147483648, %v582_v57  ;;  %v584_v58 = vpop.eup %583 }
  0xf2   :  { %v384_v39 = vsel %vm382_vm6, %v383_v32, %v582_v57  ;;  %v470_v0 = vmul.f32 %v469_v25, %v467_v38  ;;  %v586_v60 = vpop.eup %585  ;;  %v255_v3 = vxor.u32 2147483648, %v584_v58 }
  0xf3   :  { %v381_v28 = vsel %vm379_vm7, %v580_v27, %v380_v34  ;;  %v252_v54 = vxor.u32 2147483648, %v586_v60 }
  0xf4   :  { %v385_v41 = vsel %vm378_vm9, %v381_v28, %v384_v39  ;;  %v471_v53 = vxor.u32 2147483648, %v470_v0  ;;  %v256_v6 = vsel %vm254_vm13, %v255_v3, %v586_v60 }
  0xf5   :  { %v386_v31 = vsel %vm375_vm8, nan, %v385_v41  ;;  %v253_v59 = vsel %vm251_vm12, %v584_v58, %v252_v54 }
  0xf6   :  { %v491_v48 = vmul.f32 %v386_v31, %v154_v26  ;;  %v472_v56 = vsel %vm389_vm10, %v471_v53, %v470_v0  ;;  %v257_v7 = vsel %vm250_vm14, %v253_v59, %v256_v6 }
  0xf7   :  { %v475_v52 = vsel %vm388_vm11, %v688_v46, %v472_v56  ;;  %v258_v14 = vsel %vm247_vm2, nan, %v257_v7 }
  0xf8   :  { %v505_v11 = vmul.f32 %v498_v47, %v491_v48  ;;  %587 = vcosq.f32 %v475_v52 }
  0xf9   :  { %589 = vsinq.f32 %v475_v52 }
  0xfa   :  { %507 = vst [vmem:[#allocation2] sm:$0xff] %v505_v11 }
 0x102   :  { %v588_v5 = vpop.eup %587 }
 0x103   :  { %v590_v49 = vpop.eup %589  ;;  %v487_v2 = vxor.u32 2147483648, %v588_v5 }
 0x104   :  { %v484_v45 = vxor.u32 2147483648, %v590_v49 }
 0x105   :  { %v488_v8 = vsel %vm486_vm15, %v487_v2, %v590_v49 }
 0x106   :  { %v485_v43 = vsel %vm483_vm0, %v588_v5, %v484_v45 }
 0x107   :  { %v489_v10 = vsel %vm482_vm1, %v485_v43, %v488_v8 }
 0x108   :  { %v490_v13 = vsel %vm479_vm3, nan, %v489_v10 }
 0x109   :  { %v492_v15 = vmul.f32 %v490_v13, %v258_v14 }
 0x10b   :  { %v506_v16 = vmul.f32 %v503_v12, %v492_v15 }
 0x10d   :  { %508 = vst [vmem:[#allocation2 + $0x8] sm:$0xff] %v506_v16 }
 0x10e   :  { %602 = shalt.err (!%p599_p4)
}
 0x10f   :  { %s603_s30 = scalar_lea.hbm %s946_s4, 256 }
 0x110   :  { %p604_p5 = scmp.ne.s32.totalorder %s946_s4, %s603_s30  ;;  %p607_p6 = scmp.lt.u32.totalorder %s603_s30, %s946_s4 }
 0x112   :  { %p609_p7 = pnand %p607_p6, %p604_p5 }
 0x114   :  { %612 = shalt.err (!%p609_p7)
}
 0x115   :  { %s624_s9 = smov 128   ;;  %s625_s10 = smov 8  }
 0x116   :  { %520 = dma.vmem_to_hbm [thread:$0]  %s515_s3, 256, %s946_s4, [#allocation3], %s624_s9, %s624_s9, %s625_s10  }
 0x117   :  { %613 = dma.done.wait [#allocation3], 256  }
 0x118   :  { %614 = vsyncadd [#allocation3], 4294967040 }
 0x119   :  { %524 = vsyncpa [#allocation3], 1 }

</bundles_post_ra>
